<compile_context>
chip_gen: v6e
topology: v6e:2x2x1
jax: 0.10.0
libtpu: 0.0.40
codegen_flags: <defaults>
</compile_context>

<pallas_src>
import jax
import jax.numpy as jnp
from jax.experimental import pallas as pl
from jax.experimental.pallas import tpu as pltpu


def _round_up(x, m):
    return -(-x // m) * m


def create_weights(params, Ls, add_bias):
    """Split flat params exactly like MLP.create_weights (param batch == 1)."""
    weights, biases = [], []
    end = 0
    for in_size, out_size in zip(Ls[:-1], Ls[1:]):
        start = end
        end = start + in_size * out_size
        w = params[0, start:end].reshape(out_size, in_size)
        if add_bias:
            b = params[0, end:end + out_size]
            end = end + out_size
        else:
            b = jnp.zeros((out_size,), params.dtype)
        weights.append(w)
        biases.append(b)
    return weights, biases


def _make_mlp_kernel(n_layers, rows, compute_dtype):
    """rows[i] = 8/16-aligned output row count of layer i (real rows + inert zero rows)."""
    def kernel(x_ref, w0_ref, ws_ref, b_ref, o_ref, h_ref):
        # Zero the activation scratch every step: rows no layer writes must be exactly 0
        # (they meet zero-padded weight columns, but uninitialized VMEM could hold NaN and
        # 0 * NaN = NaN). Unconditional so each megacore shard initializes its own scratch.
        h_ref[...] = jnp.zeros_like(h_ref)

        # Layer 0: transpose the (tb, in_dim) states tile in-kernel (XLU has slack) instead
        # of a wrapper-side HBM round trip; MXU runs bf16 operands with f32 accumulation.
        x_t = x_ref[...].T.astype(compute_dtype)                    # (in_dim, tb)
        acc = jnp.dot(w0_ref[...], x_t,
                      preferred_element_type=jnp.float32)           # (rows0, tb) f32

        h = None
        for i in range(n_layers):
            if i > 0:
                w = ws_ref[i - 1, :rows[i], :]                      # (rows_i, d_pad) bf16
                acc = jnp.dot(w, h, preferred_element_type=jnp.float32)
            # f32 epilogue restricted to the real (8/16-aligned) rows only.
            act = jnp.tanh(acc + b_ref[i, :rows[i], :])             # (rows_i, tb) f32
            if i < n_layers - 1:
                h_ref[:rows[i], :] = act.astype(h_ref.dtype)        # only active rows
                h = h_ref[...]                                      # (d_pad, tb)
            else:
                o_ref[...] = act.astype(o_ref.dtype)
    return kernel


def _num_tensorcores_per_chip():
    """Best-effort: v5e/v6e have 1 TensorCore per chip; v4/v5p/v7x have 2."""
    try:
        kind = jax.devices()[0].device_kind.lower()
    except Exception:
        return 1
    if "lite" in kind or "v5e" in kind or "v6e" in kind:
        return 1
    return 2


def _pick_tb(batch, n_cores):
    n128 = pl.cdiv(batch, 128)
    if n_cores >= 2 and n128 >= 2:
        # Keep >= 2 grid steps so the "parallel" batch axis feeds both TensorCores.
        return 128 if n128 < 4 else 256
    # Single TensorCore: fewest, fattest steps (amortize ~0.35us/step grid overhead,
    # feed the full MXU N width per weight push).
    return int(min(512, 128 * n128))


def mlp_forward(states, params, Ls, add_bias=True, tb=None,
                compute_dtype=jnp.bfloat16):
    """states: (B, Ls[0]); params: (1, len_params). Returns (1, Ls[-1], B)."""
    weights, biases = create_weights(params, Ls, add_bias)
    n_layers = len(weights)
    B, in_dim = states.shape
    assert in_dim == Ls[0]
    out_dim = Ls[-1]
    out_dtype = jnp.promote_types(states.dtype, params.dtype)

    if tb is None:
        tb = _pick_tb(B, _num_tensorcores_per_chip())
    num_tiles = pl.cdiv(B, tb)
    b_pad = num_tiles * tb

    # Per-layer active row counts: real out_size rounded to a sublane-friendly multiple
    # (16 for packed-bf16 intermediates, 8 for the f32 final output block).
    sub = 16 if jnp.dtype(compute_dtype) == jnp.dtype(jnp.bfloat16) else 8
    rows = [_round_up(o, sub) for o in Ls[1:]]
    rows[-1] = _round_up(out_dim, 8)
    max_rows = max(rows)

    # Common lane-padded feature width for the hidden layers' K dimension.
    d_pad = _round_up(max(Ls[1:]), 128)

    cdt = compute_dtype
    f32 = jnp.float32

    # Layer-0 weight at its real (unpadded) K width -> the raw states tile is contracted
    # in-kernel; no wrapper-side transpose / pad of the activation array at all.
    w0 = jnp.pad(weights[0].astype(cdt), ((0, rows[0] - Ls[1]), (0, 0)))   # (rows0, in_dim)

    if n_layers > 1:
        ws = jnp.stack([
            jnp.pad(w.astype(cdt),
                    ((0, d_pad - w.shape[0]), (0, d_pad - w.shape[1])))
            for w in weights[1:]])                     # (n_layers-1, d_pad, d_pad) bf16
    else:
        ws = jnp.zeros((1, d_pad, d_pad), cdt)         # unused dummy (keeps specs uniform)
    n_slab = ws.shape[0]

    b_slab = jnp.stack([
        jnp.pad(b.astype(f32).reshape(-1, 1), ((0, max_rows - b.shape[0]), (0, 0)))
        for b in biases])                              # (n_layers, max_rows, 1) f32 epilogue

    kernel = _make_mlp_kernel(n_layers, tuple(rows), cdt)

    # Explicit scoped-VMEM budget: resident slabs + double-buffered I/O tiles + scratch.
    c_bytes = jnp.dtype(cdt).itemsize
    est = (2 * tb * in_dim * states.dtype.itemsize      # input tile (double buffered)
           + 2 * rows[0] * in_dim * c_bytes             # layer-0 weight
           + 2 * n_slab * d_pad * d_pad * c_bytes       # weight slab
           + 2 * n_layers * max_rows * 4                # bias slab
           + 2 * rows[-1] * tb * 4                      # output tile (double buffered)
           + d_pad * tb * c_bytes)                      # activation scratch
    vmem_limit = int(min(max(2 * est + (2 << 20), 32 << 20), 64 << 20))

    def call(single_buffer_weights):
        # Weights/biases have constant index_maps (resident across the batch grid);
        # Buffered(1) drops their pointless double buffering and halves resident VMEM.
        res_kw = {"pipeline_mode": pl.Buffered(1)} if single_buffer_weights else {}
        return pl.pallas_call(
            kernel,
            out_shape=jax.ShapeDtypeStruct((rows[-1], b_pad), out_dtype),
            grid=(num_tiles,),
            in_specs=[
                pl.BlockSpec((tb, in_dim), lambda i: (i, 0)),                   # batch tile
                pl.BlockSpec((rows[0], in_dim), lambda i: (0, 0), **res_kw),    # resident
                pl.BlockSpec((n_slab, d_pad, d_pad), lambda i: (0, 0, 0), **res_kw),
                pl.BlockSpec((n_layers, max_rows, 1), lambda i: (0, 0, 0), **res_kw),
            ],
            out_specs=pl.BlockSpec((rows[-1], tb), lambda i: (0, i)),           # lane-dense
            scratch_shapes=[pltpu.VMEM((d_pad, tb), cdt)],                      # activations
            compiler_params=pltpu.CompilerParams(
                dimension_semantics=("parallel",),      # megacore-shards the batch axis
                vmem_limit_bytes=vmem_limit),
        )(states, w0, ws, b_slab)

    # TODO(synk): for hidden dims ~1K+ switch to a (batch, layer) grid that streams one
    # layer's weights at a time instead of keeping the whole slab resident (v7x: 64 MiB).
    try:
        y = call(True)
    except Exception:
        # Older JAX without BlockSpec(pipeline_mode=...): fall back to default buffering.
        y = call(False)

    # Already (out, batch) like the torch module; drop row/batch padding.
    return y[None, :out_dim, :B]


def mlp_reference(states, params, Ls, add_bias=True):
    """Pure-JAX (f32) transcription of the PyTorch forward (for verification)."""
    weights, biases = create_weights(params, Ls, add_bias)
    outputs = states.T                                   # (in, B)
    for w, b in zip(weights, biases):
        outputs = jnp.tanh(w @ outputs + b[:, None])     # (out, B)
    return outputs[None, :, :]                           # (1, out, B)


if __name__ == "__main__":
    key = jax.random.PRNGKey(0)
    Ls = [16, 32, 8]          # input dim, hidden dim, n_actions
    add_bias = True
    B = 200                   # non-multiple of 128 -> exercises partial batch tiles

    len_params = sum((i + int(add_bias)) * o for i, o in zip(Ls[:-1], Ls[1:]))

    k1, k2 = jax.random.split(key)
    states = jax.random.normal(k1, (B, Ls[0]), dtype=jnp.float32)
    params = 0.1 * jax.random.normal(k2, (1, len_params), dtype=jnp.float32)

    out = mlp_forward(states, params, Ls, add_bias)
    out = jax.block_until_ready(out)

    ref = mlp_reference(states, params, Ls, add_bias)
    assert out.shape == (1, Ls[-1], B), out.shape
    # bf16 MXU path vs f32 reference -> loosened tolerance (outputs are in [-1, 1]).
    max_err = float(jnp.max(jnp.abs(out.astype(jnp.float32) - ref)))
    assert jnp.allclose(out, ref, atol=3e-2, rtol=3e-2), f"mismatch vs reference, max_err={max_err}"

    print("KERNEL_OK")
</pallas_src>

<mosaic_0001>
module attributes {stable_mosaic.version = 11 : i64} {
  func.func @kernel(%arg0: i32, %arg1: memref<128x16xf32, #tpu.memory_space<vmem>>, %arg2: memref<32x16xbf16, #tpu.memory_space<vmem>>, %arg3: memref<1x128x128xbf16, #tpu.memory_space<vmem>>, %arg4: memref<2x32x1xf32, #tpu.memory_space<vmem>>, %arg5: memref<8x128xf32, #tpu.memory_space<vmem>>, %arg6: memref<128x128xbf16, #tpu.memory_space<vmem>>) attributes {dimension_semantics = [#tpu.dimension_semantics<parallel>], iteration_bounds = array<i64: 2>, scalar_prefetch = 0 : i64, scratch_operands = 1 : i64, tpu.core_type = #tpu.core_type<tc>, window_params = [{transform_indices = @transform_0, window_bounds = array<i64: 128, 16>}, {pipeline_mode = #tpu.pipeline_mode<synchronous>, transform_indices = @transform_1, window_bounds = array<i64: 32, 16>}, {pipeline_mode = #tpu.pipeline_mode<synchronous>, transform_indices = @transform_2, window_bounds = array<i64: 1, 128, 128>}, {pipeline_mode = #tpu.pipeline_mode<synchronous>, transform_indices = @transform_3, window_bounds = array<i64: 2, 32, 1>}, {transform_indices = @transform_4, window_bounds = array<i64: 8, 128>}]} {
    %cst = arith.constant 0.000000e+00 : bf16
    %0 = vector.broadcast %cst : bf16 to vector<128x128xbf16>
    %c0 = arith.constant 0 : index
    %c0_0 = arith.constant 0 : index
    %1 = vector.load %arg6[%c0, %c0_0] : memref<128x128xbf16, #tpu.memory_space<vmem>>, vector<128x128xbf16>
    tpu.vector_store %arg6[%c0, %c0_0], %0 {strides = array<i32>} : memref<128x128xbf16, #tpu.memory_space<vmem>>, vector<128x128xbf16>,
    %c0_1 = arith.constant 0 : index
    %c0_2 = arith.constant 0 : index
    %2 = vector.load %arg1[%c0_1, %c0_2] : memref<128x16xf32, #tpu.memory_space<vmem>>, vector<128x16xf32>
    %3 = tpu.transpose %2, [1, 0] : vector<128x16xf32> -> vector<16x128xf32>
    %4 = arith.truncf %3 : vector<16x128xf32> to vector<16x128xbf16>
    %c0_3 = arith.constant 0 : index
    %c0_4 = arith.constant 0 : index
    %5 = vector.load %arg2[%c0_3, %c0_4] : memref<32x16xbf16, #tpu.memory_space<vmem>>, vector<32x16xbf16>
    %cst_5 = arith.constant dense<0.000000e+00> : vector<32x128xf32>
    %6 = tpu.matmul %5, %4, %cst_5 {dimension_numbers = #tpu.dot_dimension_numbers<[1], [0], [0], [1], [0, 0, 1, 1], [], []>} : vector<32x16xbf16>, vector<16x128xbf16>, vector<32x128xf32> -> vector<32x128xf32>
    %c0_6 = arith.constant 0 : index
    %c0_7 = arith.constant 0 : index
    %c0_8 = arith.constant 0 : index
    %7 = vector.load %arg4[%c0_6, %c0_7, %c0_8] : memref<2x32x1xf32, #tpu.memory_space<vmem>>, vector<1x32x1xf32>
    %8 = vector.shape_cast %7 : vector<1x32x1xf32> to vector<32x1xf32>
    %9 = vector.broadcast %8 : vector<32x1xf32> to vector<32x128xf32>
    %10 = arith.addf %6, %9 : vector<32x128xf32>
    %11 = math.tanh %10 : vector<32x128xf32>
    %12 = arith.truncf %11 : vector<32x128xf32> to vector<32x128xbf16>
    %c0_9 = arith.constant 0 : index
    %c0_10 = arith.constant 0 : index
    %13 = vector.load %arg6[%c0_9, %c0_10] : memref<128x128xbf16, #tpu.memory_space<vmem>>, vector<32x128xbf16>
    tpu.vector_store %arg6[%c0_9, %c0_10], %12 {strides = array<i32>} : memref<128x128xbf16, #tpu.memory_space<vmem>>, vector<32x128xbf16>,
    %c0_11 = arith.constant 0 : index
    %c0_12 = arith.constant 0 : index
    %14 = vector.load %arg6[%c0_11, %c0_12] : memref<128x128xbf16, #tpu.memory_space<vmem>>, vector<128x128xbf16>
    %c0_13 = arith.constant 0 : index
    %c0_14 = arith.constant 0 : index
    %c0_15 = arith.constant 0 : index
    %15 = vector.load %arg3[%c0_13, %c0_14, %c0_15] : memref<1x128x128xbf16, #tpu.memory_space<vmem>>, vector<1x8x128xbf16>
    %16 = vector.shape_cast %15 : vector<1x8x128xbf16> to vector<8x128xbf16>
    %cst_16 = arith.constant dense<0.000000e+00> : vector<8x128xf32>
    %17 = tpu.matmul %16, %14, %cst_16 {dimension_numbers = #tpu.dot_dimension_numbers<[1], [0], [0], [1], [0, 0, 1, 1], [], []>} : vector<8x128xbf16>, vector<128x128xbf16>, vector<8x128xf32> -> vector<8x128xf32>
    %c1 = arith.constant 1 : index
    %c0_17 = arith.constant 0 : index
    %c0_18 = arith.constant 0 : index
    %18 = vector.load %arg4[%c1, %c0_17, %c0_18] : memref<2x32x1xf32, #tpu.memory_space<vmem>>, vector<1x8x1xf32>
    %19 = vector.shape_cast %18 : vector<1x8x1xf32> to vector<8x1xf32>
    %20 = vector.broadcast %19 : vector<8x1xf32> to vector<8x128xf32>
    %21 = arith.addf %17, %20 : vector<8x128xf32>
    %22 = math.tanh %21 : vector<8x128xf32>
    %c0_19 = arith.constant 0 : index
    %c0_20 = arith.constant 0 : index
    %23 = vector.load %arg5[%c0_19, %c0_20] : memref<8x128xf32, #tpu.memory_space<vmem>>, vector<8x128xf32>
    tpu.vector_store %arg5[%c0_19, %c0_20], %22 {strides = array<i32>} : memref<8x128xf32, #tpu.memory_space<vmem>>, vector<8x128xf32>,
    return
  }
  func.func @transform_0(%arg0: i32) -> (i32, i32) {
    %c0_i32 = arith.constant 0 : i32
    %c0_i32_0 = arith.constant 0 : i32
    return %arg0, %c0_i32 : i32, i32
  }
  func.func @transform_1(%arg0: i32) -> (i32, i32) {
    %c0_i32 = arith.constant 0 : i32
    %c0_i32_0 = arith.constant 0 : i32
    %c0_i32_1 = arith.constant 0 : i32
    return %c0_i32, %c0_i32_0 : i32, i32
  }
  func.func @transform_2(%arg0: i32) -> (i32, i32, i32) {
    %c0_i32 = arith.constant 0 : i32
    %c0_i32_0 = arith.constant 0 : i32
    %c0_i32_1 = arith.constant 0 : i32
    %c0_i32_2 = arith.constant 0 : i32
    return %c0_i32, %c0_i32_0, %c0_i32_1 : i32, i32, i32
  }
  func.func @transform_3(%arg0: i32) -> (i32, i32, i32) {
    %c0_i32 = arith.constant 0 : i32
    %c0_i32_0 = arith.constant 0 : i32
    %c0_i32_1 = arith.constant 0 : i32
    %c0_i32_2 = arith.constant 0 : i32
    return %c0_i32, %c0_i32_0, %c0_i32_1 : i32, i32, i32
  }
  func.func @transform_4(%arg0: i32) -> (i32, i32) {
    %c0_i32 = arith.constant 0 : i32
    %c0_i32_0 = arith.constant 0 : i32
    return %c0_i32, %arg0 : i32, i32
  }
}

module attributes {stable_mosaic.version = 11 : i64} {
  func.func @kernel(%arg0: i32, %arg1: memref<128x16xf32, #tpu.memory_space<vmem>>, %arg2: memref<32x16xbf16, #tpu.memory_space<vmem>>, %arg3: memref<1x128x128xbf16, #tpu.memory_space<vmem>>, %arg4: memref<2x32x1xf32, #tpu.memory_space<vmem>>, %arg5: memref<8x128xf32, #tpu.memory_space<vmem>>, %arg6: memref<128x128xbf16, #tpu.memory_space<vmem>>) attributes {dimension_semantics = [#tpu.dimension_semantics<parallel>], iteration_bounds = array<i64: 2>, scalar_prefetch = 0 : i64, scratch_operands = 1 : i64, tpu.core_type = #tpu.core_type<tc>, window_params = [{transform_indices = @transform_0, window_bounds = array<i64: 128, 16>}, {pipeline_mode = #tpu.pipeline_mode<synchronous>, transform_indices = @transform_1, window_bounds = array<i64: 32, 16>}, {pipeline_mode = #tpu.pipeline_mode<synchronous>, transform_indices = @transform_2, window_bounds = array<i64: 1, 128, 128>}, {pipeline_mode = #tpu.pipeline_mode<synchronous>, transform_indices = @transform_3, window_bounds = array<i64: 2, 32, 1>}, {transform_indices = @transform_4, window_bounds = array<i64: 8, 128>}]} {
    %cst = arith.constant 0.000000e+00 : bf16
    %0 = vector.broadcast %cst : bf16 to vector<128x128xbf16>
    %c0 = arith.constant 0 : index
    %c0_0 = arith.constant 0 : index
    %1 = vector.load %arg6[%c0, %c0_0] : memref<128x128xbf16, #tpu.memory_space<vmem>>, vector<128x128xbf16>
    tpu.vector_store %arg6[%c0, %c0_0], %0 {strides = array<i32>} : memref<128x128xbf16, #tpu.memory_space<vmem>>, vector<128x128xbf16>,
    %c0_1 = arith.constant 0 : index
    %c0_2 = arith.constant 0 : index
    %2 = vector.load %arg1[%c0_1, %c0_2] : memref<128x16xf32, #tpu.memory_space<vmem>>, vector<128x16xf32>
    %3 = tpu.transpose %2, [1, 0] : vector<128x16xf32> -> vector<16x128xf32>
    %4 = arith.truncf %3 : vector<16x128xf32> to vector<16x128xbf16>
    %c0_3 = arith.constant 0 : index
    %c0_4 = arith.constant 0 : index
    %5 = vector.load %arg2[%c0_3, %c0_4] : memref<32x16xbf16, #tpu.memory_space<vmem>>, vector<32x16xbf16>
    %cst_5 = arith.constant dense<0.000000e+00> : vector<32x128xf32>
    %6 = tpu.matmul %5, %4, %cst_5 {dimension_numbers = #tpu.dot_dimension_numbers<[1], [0], [0], [1], [0, 0, 1, 1], [], []>} : vector<32x16xbf16>, vector<16x128xbf16>, vector<32x128xf32> -> vector<32x128xf32>
    %c0_6 = arith.constant 0 : index
    %c0_7 = arith.constant 0 : index
    %c0_8 = arith.constant 0 : index
    %7 = vector.load %arg4[%c0_6, %c0_7, %c0_8] : memref<2x32x1xf32, #tpu.memory_space<vmem>>, vector<1x32x1xf32>
    %8 = vector.shape_cast %7 : vector<1x32x1xf32> to vector<32x1xf32>
    %9 = vector.broadcast %8 : vector<32x1xf32> to vector<32x128xf32>
    %10 = arith.addf %6, %9 : vector<32x128xf32>
    %11 = math.tanh %10 : vector<32x128xf32>
    %12 = arith.truncf %11 : vector<32x128xf32> to vector<32x128xbf16>
    %c0_9 = arith.constant 0 : index
    %c0_10 = arith.constant 0 : index
    %13 = vector.load %arg6[%c0_9, %c0_10] : memref<128x128xbf16, #tpu.memory_space<vmem>>, vector<32x128xbf16>
    tpu.vector_store %arg6[%c0_9, %c0_10], %12 {strides = array<i32>} : memref<128x128xbf16, #tpu.memory_space<vmem>>, vector<32x128xbf16>,
    %c0_11 = arith.constant 0 : index
    %c0_12 = arith.constant 0 : index
    %14 = vector.load %arg6[%c0_11, %c0_12] : memref<128x128xbf16, #tpu.memory_space<vmem>>, vector<128x128xbf16>
    %c0_13 = arith.constant 0 : index
    %c0_14 = arith.constant 0 : index
    %c0_15 = arith.constant 0 : index
    %15 = vector.load %arg3[%c0_13, %c0_14, %c0_15] : memref<1x128x128xbf16, #tpu.memory_space<vmem>>, vector<1x8x128xbf16>
    %16 = vector.shape_cast %15 : vector<1x8x128xbf16> to vector<8x128xbf16>
    %cst_16 = arith.constant dense<0.000000e+00> : vector<8x128xf32>
    %17 = tpu.matmul %16, %14, %cst_16 {dimension_numbers = #tpu.dot_dimension_numbers<[1], [0], [0], [1], [0, 0, 1, 1], [], []>} : vector<8x128xbf16>, vector<128x128xbf16>, vector<8x128xf32> -> vector<8x128xf32>
    %c1 = arith.constant 1 : index
    %c0_17 = arith.constant 0 : index
    %c0_18 = arith.constant 0 : index
    %18 = vector.load %arg4[%c1, %c0_17, %c0_18] : memref<2x32x1xf32, #tpu.memory_space<vmem>>, vector<1x8x1xf32>
    %19 = vector.shape_cast %18 : vector<1x8x1xf32> to vector<8x1xf32>
    %20 = vector.broadcast %19 : vector<8x1xf32> to vector<8x128xf32>
    %21 = arith.addf %17, %20 : vector<8x128xf32>
    %22 = math.tanh %21 : vector<8x128xf32>
    %c0_19 = arith.constant 0 : index
    %c0_20 = arith.constant 0 : index
    %23 = vector.load %arg5[%c0_19, %c0_20] : memref<8x128xf32, #tpu.memory_space<vmem>>, vector<8x128xf32>
    tpu.vector_store %arg5[%c0_19, %c0_20], %22 {strides = array<i32>} : memref<8x128xf32, #tpu.memory_space<vmem>>, vector<8x128xf32>,
    return
  }
  func.func @transform_0(%arg0: i32) -> (i32, i32) {
    %c0_i32 = arith.constant 0 : i32
    %c0_i32_0 = arith.constant 0 : i32
    return %arg0, %c0_i32 : i32, i32
  }
  func.func @transform_1(%arg0: i32) -> (i32, i32) {
    %c0_i32 = arith.constant 0 : i32
    %c0_i32_0 = arith.constant 0 : i32
    %c0_i32_1 = arith.constant 0 : i32
    return %c0_i32, %c0_i32_0 : i32, i32
  }
  func.func @transform_2(%arg0: i32) -> (i32, i32, i32) {
    %c0_i32 = arith.constant 0 : i32
    %c0_i32_0 = arith.constant 0 : i32
    %c0_i32_1 = arith.constant 0 : i32
    %c0_i32_2 = arith.constant 0 : i32
    return %c0_i32, %c0_i32_0, %c0_i32_1 : i32, i32, i32
  }
  func.func @transform_3(%arg0: i32) -> (i32, i32, i32) {
    %c0_i32 = arith.constant 0 : i32
    %c0_i32_0 = arith.constant 0 : i32
    %c0_i32_1 = arith.constant 0 : i32
    %c0_i32_2 = arith.constant 0 : i32
    return %c0_i32, %c0_i32_0, %c0_i32_1 : i32, i32, i32
  }
  func.func @transform_4(%arg0: i32) -> (i32, i32) {
    %c0_i32 = arith.constant 0 : i32
    %c0_i32_0 = arith.constant 0 : i32
    return %c0_i32, %arg0 : i32, i32
  }
}

</mosaic_0001>

<bundles_post_ra>
// kernel: tpu_custom_call.1
= control target key start
LH: loop header
LB: loop body
LE: loop exit
PB: predicated region body
PF: predicated region fallthrough
CT: control target
= control target key end

     0   :  { %9 = vsyncpa [#allocation4], 0  ;;  %s961_s0 = inlined_call_operand.vmem [shape: f32[200,16], index: 0, kind: input, shape index: {}]   ;;  %s962_s1 = inlined_call_operand.vmem [shape: bf16[32,16], index: 1, kind: input, shape index: {}]   ;;  %s963_s2 = inlined_call_operand.vmem [shape: bf16[1,128,128], index: 2, kind: input, shape index: {}]   ;;  %s964_s3 = inlined_call_operand.vmem [shape: f32[2,32,1], index: 3, kind: input, shape index: {}]   ;;  %s965_s4 = inlined_call_operand.hbm [shape: f32[8,256], index: 4, kind: output, shape index: {}]  }
   0x1   :  { %11 = vsyncpa [#allocation4 + $0x1], 0  ;;  %s825_s15 = smov 0   ;;  %s827_s16 = smov 0  }
   0x2   :  { %s829_s17 = smov 0   ;;  %s831_s18 = smov 0  }
   0x3 LB: > { %s846_s19 = sadd.s32 4294967295, %s794_s18   ;;  %s589_s20 = sadd.s32 4294967294, %s794_s18   ;;  %s794_s18 = sphi %s831_s18, %s971_s18   ;;  %s790_s17 = sphi %s829_s17, %s970_s17   ;;  %s786_s16 = sphi %s827_s16, %s969_s16   ;;  %s782_s15 = sphi %s825_s15, %s968_s15  }
   0x4   : > { %s850_s21 = sadd.s32 1, %s794_s18   ;;  %s113_s22 = sadd.s32 1, %s790_s17 }
   0x5   : > { %s110_s23 = ssub.s32 %s794_s18, %s850_s21  ;;  %p123_p0 = scmp.ne.s32.totalorder %s790_s17, %s786_s16 }
   0x6   : > { %p111_p1 = scmp.eq.s32.totalorder %s110_s23, 0  ;;  %p124_p2 = scmp.eq.s32.totalorder %s846_s19, 1 }
   0x7   : > { %p129_p3 = scmp.ne.s32.totalorder %s786_s16, %s782_s15  ;;  %p130_p4 = scmp.eq.s32.totalorder %s589_s20, 1 }
   0x8   : > { %s861_s24 = scalar_select %p111_p1, %s790_s17, %s113_s22  }
   0x9   : > { %p863_p5 = por %p124_p2, %p123_p0  ;;  %p867_p6 = por %p130_p4, %p129_p3 }
   0xa   : > { %p592_p7 = scmp.ge.s32.totalorder %s794_s18, 1  ;;  %p174_p8 = scmp.lt.s32.totalorder %s794_s18, 3 }
   0xc   : > { %p175_p9 = pnand %p592_p7, %p174_p8 }
   0xd   : > { %s594_s27 = sshll.u32 (!%p175_p9), %s846_s19, 4  ;;  %s614_s7 = sshll.u32 (!%p175_p9), %s846_s19, 7 }
   0xe   : > { %178 = sbr.rel (%p175_p9) target bundleno = 610 (0x262), region = 36  ;;  %p209_p10 = scmp.lt.s32.totalorder (!%p175_p9), %s594_s27, 24 }
   0xf   : > { %s926_s12 = scalar_lea.hbm (!%p175_p9), %s965_s4, %s614_s7  ;;  %s799_s20 = smov (!%p175_p9), [#allocation3]  }
  0x10   : > { %s738_s22 = sshll.u32 (!%p175_p9), %s799_s20, 4  ;;  %s739_s22 = int_to_ptr.vmem [resolvable:$false] %s738_s22 }
  0x11   : > { %s740_s19 = scalar_lea.vmem (!%p175_p9), %s739_s22, 256 }
  0x13   : > { %s973_s27 = smov (!%p209_p10, %s594_s27), 24  ;;  %v714_v2 = vld [vmem:[%s962_s1] sm:$0xff]   ;;  %vm322_vm0 = vcmask 130048   ;;  %v290_v4 = vld [vmem:[%s964_s3 + $0x10] sm:$0xff]  ;;  %v796_v5 = vmov 0   ;;  %v291_v7 = vld [vmem:[%s964_s3 + $0x18] sm:$0xff] }
  0x14   : > { %s595_s28 = sshll.u32 %s973_s27, 3  ;;  %646 = vmatprep.mubr.msk.bf16.mxu0 %vm322_vm0, %v714_v2  ;;  %712 = vset.pattern.permute.xlu1 %v796_v5  ;;  %219 = vst [vmem:[#allocation2] sm:$0xf] %v796_v5  ;;  %220 = vst [vmem:[#allocation2 + $0x4] sm:$0xf] %v796_v5  ;;  %v288_v9 = vld [vmem:[%s964_s3] sm:$0xff] }
  0x15   : > { %s877_s5 = scalar_lea.vmem %s961_s0, %s595_s28  ;;  %221 = vst [vmem:[#allocation2 + $0x8] sm:$0xf] %v796_v5  ;;  %222 = vst [vmem:[#allocation2 + $0xc] sm:$0xf] %v796_v5  ;;  %304 = vperm.xlu1 %712, %v290_v4   ;;  %v289_v11 = vld [vmem:[%s964_s3 + $0x8] sm:$0xff]  ;;  %v604_v13 = vld [vmem:[%s964_s3 + $0x20] sm:$0xff] }
  0x16   : > { %v235_v0 = vld [vmem:[%s877_s5] sm:$0xff]  ;;  %v236_v1 = vld [vmem:[%s877_s5 + $0x8] sm:$0xff]  ;;  %v237_v3 = vld [vmem:[%s877_s5 + $0x10] sm:$0xff]  ;;  %223 = vst [vmem:[#allocation2 + $0x10] sm:$0xf] %v796_v5  ;;  %v797_v28 = vmov 0.0  }
  0x17   : > { %251 = vxpose.xlu0.b32.start [1/16] (narrow) %v235_v0, 16  ;;  %224 = vst [vmem:[#allocation2 + $0x14] sm:$0xf] %v796_v5  ;;  %225 = vst [vmem:[#allocation2 + $0x18] sm:$0xf] %v796_v5  ;;  %v238_v6 = vld [vmem:[%s877_s5 + $0x18] sm:$0xff]  ;;  %650 = vmatprep.subr.bf16.mxu1 %v797_v28 }
  0x18   : > { %226 = vst [vmem:[#allocation2 + $0x1c] sm:$0xf] %v796_v5  ;;  %227 = vst [vmem:[#allocation2 + $0x20] sm:$0xf] %v796_v5  ;;  %v239_v8 = vld [vmem:[%s877_s5 + $0x20] sm:$0xff]  ;;  %v240_v10 = vld [vmem:[%s877_s5 + $0x28] sm:$0xff] }
  0x19   : > { %228 = vst [vmem:[#allocation2 + $0x24] sm:$0xf] %v796_v5  ;;  %229 = vst [vmem:[#allocation2 + $0x28] sm:$0xf] %v796_v5  ;;  %309 = vperm.xlu1 %712, %v291_v7   ;;  %v241_v12 = vld [vmem:[%s877_s5 + $0x30] sm:$0xff]  ;;  %v242_v14 = vld [vmem:[%s877_s5 + $0x38] sm:$0xff] }
  0x1a   : > { %230 = vst [vmem:[#allocation2 + $0x2c] sm:$0xf] %v796_v5  ;;  %231 = vst [vmem:[#allocation2 + $0x30] sm:$0xf] %v796_v5  ;;  %v243_v15 = vld [vmem:[%s877_s5 + $0x40] sm:$0xff]  ;;  %v244_v16 = vld [vmem:[%s877_s5 + $0x48] sm:$0xff] }
  0x1b   : > { %252 = vxpose.xlu0.b32.cont [2/16] (narrow) %v236_v1, 16  ;;  %232 = vst [vmem:[#allocation2 + $0x34] sm:$0xf] %v796_v5  ;;  %233 = vst [vmem:[#allocation2 + $0x38] sm:$0xf] %v796_v5  ;;  %v245_v17 = vld [vmem:[%s877_s5 + $0x50] sm:$0xff] }
  0x1c   : > { %234 = vst [vmem:[#allocation2 + $0x3c] sm:$0xf] %v796_v5  ;;  %v246_v18 = vld [vmem:[%s877_s5 + $0x58] sm:$0xff]  ;;  %v247_v19 = vld [vmem:[%s877_s5 + $0x60] sm:$0xff]  ;;  %v248_v20 = vld [vmem:[%s877_s5 + $0x68] sm:$0xff]  ;;  %vm798_vm1 = vmmov 0  }
  0x1d   : > { %294 = vperm.xlu1 %712, %v288_v9   ;;  %v249_v21 = vld [vmem:[%s877_s5 + $0x70] sm:$0xff]  ;;  %v250_v22 = vld [vmem:[%s877_s5 + $0x78] sm:$0xff]  ;;  %v715_v26 = vld [vmem:[%s962_s1 + $0x8] sm:$0xff]   ;;  %666 = vmatprep.mubr.msk.bf16.mxu1 %vm798_vm1, %v797_v28  ;;  %s201_s5 = sand.u32 1, %s786_s16  }
  0x1e   : > { %v721_v33 = vld [vmem:[#allocation2 + $0x10] sm:$0xff]   ;;  %v418_v54 = vld [vmem:[%s963_s2] sm:$0xf]  ;;  %s593_s6 = sshll.u32 %s201_s5, 3  ;;  %s517_s13 = scalar_lea.sflag [#allocation4], %s201_s5 }
  0x1f   : > { %253 = vxpose.xlu0.b32.cont [3/16] (narrow) %v237_v3, 16  ;;  %v720_v32 = vld [vmem:[#allocation2 + $0x18] sm:$0xff]   ;;  %s203_s8 = scalar_lea.vmem [#allocation3], %s593_s6 }
  0x20   : > { %v719_v31 = vld [vmem:[#allocation2 + $0x20] sm:$0xff]   ;;  %s530_s9 = sshll.u32 %s203_s8, 4  ;;  %s531_s9 = int_to_ptr.vmem [resolvable:$true] %s530_s9 }
  0x21   : > { %299 = vperm.xlu1 %712, %v289_v11   ;;  %v718_v30 = vld [vmem:[#allocation2 + $0x28] sm:$0xff]   ;;  %s734_s14 = scalar_lea.vmem %s531_s9, 128  ;;  %p741_p0 = scmp.lt.s32.totalorder %s531_s9, %s739_s22 }
  0x22   : > { %v717_v29 = vld [vmem:[#allocation2 + $0x30] sm:$0xff]   ;;  %p735_p11 = scmp.ne.s32.totalorder %s531_s9, %s734_s14  ;;  %p742_p1 = scmp.lt.s32.totalorder %s740_s19, %s734_s14 }
  0x23   : > { %254 = vxpose.xlu0.b32.cont [4/16] (narrow) %v238_v6, 16  ;;  %v716_v27 = vld [vmem:[#allocation2 + $0x38] sm:$0xff]  }
  0x24   : > { %651 = vmatpush3.bf16.msra.mxu1 %v716_v27  ;;  %p736_p12 = pnand %p735_p11, %p863_p5  ;;  %p743_p2 = por %p742_p1, %p741_p0 }
  0x25   : > { %423 = vperm.xlu1 %712, %v604_v13   ;;  %652 = vmatprep.subr.bf16.mxu1 %v797_v28 }
  0x26   : > { %p737_p13 = pneg %p736_p12 }
  0x27   : > { %255 = vxpose.xlu0.b32.cont [5/16] (narrow) %v239_v8, 16 }
  0x28   : > { %653 = vmatpush3.bf16.msra.mxu1 %v717_v29  ;;  %p744_p3 = pnand %p743_p2, %p737_p13 }
  0x29   : > { %654 = vmatprep.subr.bf16.mxu1 %v797_v28 }
  0x2b   : > { %256 = vxpose.xlu0.b32.cont [6/16] (narrow) %v240_v10, 16 }
  0x2c   : > { %655 = vmatpush3.bf16.msra.mxu1 %v718_v30 }
  0x2d   : > { %656 = vmatprep.subr.bf16.mxu1 %v797_v28 }
  0x2f   : > { %257 = vxpose.xlu0.b32.cont [7/16] (narrow) %v241_v12, 16 }
  0x30   : > { %657 = vmatpush3.bf16.msra.mxu1 %v719_v31 }
  0x31   : > { %658 = vmatprep.subr.bf16.mxu1 %v797_v28 }
  0x33   : > { %258 = vxpose.xlu0.b32.cont [8/16] (narrow) %v242_v14, 16 }
  0x34   : > { %659 = vmatpush3.bf16.msra.mxu1 %v720_v32 }
  0x35   : > { %660 = vmatprep.subr.bf16.mxu1 %v797_v28 }
  0x37   : > { %259 = vxpose.xlu0.b32.cont [9/16] (narrow) %v243_v15, 16 }
  0x38   : > { %661 = vmatpush3.bf16.msra.mxu1 %v721_v33 }
  0x39   : > { %662 = vmatprep.subr.bf16.mxu1 %v797_v28 }
  0x3b   : > { %260 = vxpose.xlu0.b32.cont [10/16] (narrow) %v244_v16, 16 }
  0x3f   : > { %261 = vxpose.xlu0.b32.cont [11/16] (narrow) %v245_v17, 16 }
  0x43   : > { %262 = vxpose.xlu0.b32.cont [12/16] (narrow) %v246_v18, 16 }
  0x47   : > { %263 = vxpose.xlu0.b32.cont [13/16] (narrow) %v247_v19, 16 }
  0x4b   : > { %264 = vxpose.xlu0.b32.cont [14/16] (narrow) %v248_v20, 16 }
  0x4f   : > { %265 = vxpose.xlu0.b32.cont [15/16] (narrow) %v249_v21, 16 }
  0x53   : > { %266 = vxpose.xlu0.b32.end [16/16] (narrow) %v250_v22, 16 }
  0x7c   : > { %713 = vset.pattern.permute.xlu0 %v796_v5 }
  0x90   : > { %v305_v34 = vpop.permute.xlu1 %304 }
  0x93   : > { %v267_v23 = vpop.trf.xlu0 }
  0x94   : > { %v310_v35 = vpop.permute.xlu1 %309 }
  0x97   : > { %v268_v24 = vpop.trf.xlu0 }
  0x98   : > { %v283_v25 = vpack.c.bf16 %v268_v24, %v267_v23  ;;  %v295_v36 = vpop.permute.xlu1 %294 }
  0x9a   : > { %644 = vmatprep.subr.bf16.mxu0 %v283_v25 }
  0x9b   : > { %645 = vmatpush3.bf16.msra.mxu0 %v283_v25 }
  0x9c   : > { %v300_v43 = vpop.permute.xlu1 %299 }
  0x9e   : > { %647 = vmatmul.mubr.msk.bf16.vlgmr.msra.gmra.mxu0 %vm322_vm0, %v715_v26 }
  0xa0   : > { %v424_v55 = vpop.permute.xlu1 %423 }
 0x15e   : > { %v648_v37 = vpop.f32.mrf.mxu0 }
 0x15f   : > { %v372_v38 = vadd.f32 %v648_v37, %v305_v34 }
 0x160   : > { %v363_v39 = vpop.f32.mrf.mxu0 }
 0x161   : > { %v364_v40 = vadd.f32 %v363_v39, %v295_v36  ;;  %724 = vtanh.f32 %v372_v38 }
 0x162   : > { %v649_v41 = vpop.f32.mrf.mxu0 }
 0x163   : > { %v375_v42 = vadd.f32 %v649_v41, %v310_v35 }
 0x164   : > { %v366_v44 = vpop.f32.mrf.mxu0 }
 0x165   : > { %726 = vtanh.f32 %v375_v42  ;;  %v367_v45 = vadd.f32 %v366_v44, %v300_v43 }
 0x166   : > { %728 = vtanh.f32 %v364_v40 }
 0x167   : > { %730 = vtanh.f32 %v367_v45 }
 0x16e   : > { %v725_v46 = vpop.eup %724 }
 0x172   : > { %v727_v47 = vpop.eup %726 }
 0x173   : > { %v729_v48 = vpop.eup %728  ;;  %v629_v49 = vpack.c.bf16 %v727_v47, %v725_v46 }
 0x174   : > { %v731_v50 = vpop.eup %730 }
 0x175   : > { %631 = vst [vmem:[#allocation2 + $0x8] sm:$0xff] %v629_v49   ;;  %v624_v51 = vpack.c.bf16 %v731_v50, %v729_v48 }
 0x177   : > { %625 = vst [vmem:[#allocation2] sm:$0xff] %v624_v51  }
 0x17c   : > { %v722_v52 = vld [vmem:[#allocation2 + $0x8] sm:$0xff]  }
 0x17d   : > { %663 = vmatpush3.bf16.msra.mxu1 %v722_v52 }
 0x17e   : > { %664 = vmatprep.subr.bf16.mxu1 %v797_v28  ;;  %v723_v53 = vld [vmem:[#allocation2] sm:$0xff]  }
 0x181   : > { %665 = vmatpush3.bf16.msra.mxu1 %v723_v53 }
 0x184   : > { %667 = vmatmul.mubr.bf16.vlgmr.msra.gmra.mxu1 %v418_v54 }
 0x244   : > { %v508_v56 = vpop.f32.mrf.mxu1 }
 0x245   : > { %v509_v57 = vadd.f32 %v508_v56, %v424_v55 }
 0x246   : > { %v668_v58 = vpop.f32.mrf.mxu1 }
 0x247   : > { %732 = vtanh.f32 %v509_v57 }
 0x248   : > { %v511_v59 = vpop.f32.mrf.mxu1 }
 0x24a   : > { %v669_v60 = vpop.f32.mrf.mxu1 }
 0x254   : > { %v733_v61 = vpop.eup %732 }
 0x255   : > { %515 = vst [vmem:[%s203_s8] sm:$0xff] %v733_v61 }
 0x256   : > { %747 = shalt.err (!%p744_p3)
}
 0x257   : > { %s748_s23 = scalar_lea.hbm %s926_s12, 128  ;;  %s752_s29 = scalar_lea.hbm %s965_s4, 256 }
 0x258   : > { %p749_p4 = scmp.ne.s32.totalorder %s926_s12, %s748_s23  ;;  %p753_p9 = scmp.lt.s32.totalorder %s926_s12, %s965_s4 }
 0x259   : > { %p754_p10 = scmp.lt.s32.totalorder %s752_s29, %s748_s23 }
 0x25a   : > { %p750_p7 = pnand %p749_p4, %p863_p5 }
 0x25b   : > { %p755_p11 = por %p754_p10, %p753_p9 }
 0x25c   : > { %p751_p8 = pneg %p750_p7 }
 0x25e   : > { %p756_p12 = pnand %p755_p11, %p751_p8 }
 0x260   : > { %759 = shalt.err (!%p756_p12)
}
 0x261   : > { %670 = dma.vmem_to_hbm [thread:$0]  (%p863_p5), %s531_s9, 128, %s926_s12, %s517_s13  }
 0x262 PF: > { %p676_p13 = scmp.ge.s32.totalorder %s794_s18, 2  ;;  %s542_s6 = sand.u32 1, %s782_s15  }
 0x263   : > { %s543_s7 = scalar_lea.sflag [#allocation4], %s542_s6 }
 0x264   : > { %p673_p0 = pnand %p676_p13, %p867_p6 }
 0x266   : > { %p674_p1 = pneg %p673_p0 }
 0x268   : > { %777 = dma.done.wait (%p674_p1), %s543_s7, 128  }
 0x269   : > { %779 = vsyncadd (%p674_p1), %s543_s7, 4294967168  ;;  %p14_p2 = scmp.ge.s32.totalorder %s850_s21, 4   ;;  %s968_s15 = smov %s786_s16 }
 0x26a   : > { %s969_s16 = smov %s790_s17  ;;  %s970_s17 = smov %s861_s24 }
 0x26b   : > { %s971_s18 = smov %s850_s21  ;;  %16 = sbr.rel (!%p14_p2) target bundleno = 3 (0x3), region = 72 }
 0x270   :  { %548 = vsyncpa [#allocation4], 1 }
 0x271   :  { %550 = vsyncpa [#allocation4 + $0x1], 1 }

// kernel: tpu_custom_call.1
= control target key start
LH: loop header
LB: loop body
LE: loop exit
PB: predicated region body
PF: predicated region fallthrough
CT: control target
= control target key end

     0   :  { %9 = vsyncpa [#allocation4], 0  ;;  %s961_s0 = inlined_call_operand.vmem [shape: f32[200,16], index: 0, kind: input, shape index: {}]   ;;  %s962_s1 = inlined_call_operand.vmem [shape: bf16[32,16], index: 1, kind: input, shape index: {}]   ;;  %s963_s2 = inlined_call_operand.vmem [shape: bf16[1,128,128], index: 2, kind: input, shape index: {}]   ;;  %s964_s3 = inlined_call_operand.vmem [shape: f32[2,32,1], index: 3, kind: input, shape index: {}]   ;;  %s965_s4 = inlined_call_operand.hbm [shape: f32[8,256], index: 4, kind: output, shape index: {}]  }
   0x1   :  { %11 = vsyncpa [#allocation4 + $0x1], 0  ;;  %s825_s15 = smov 0   ;;  %s827_s16 = smov 0  }
   0x2   :  { %s829_s17 = smov 0   ;;  %s831_s18 = smov 0  }
   0x3 LB: > { %s846_s19 = sadd.s32 4294967295, %s794_s18   ;;  %s589_s20 = sadd.s32 4294967294, %s794_s18   ;;  %s794_s18 = sphi %s831_s18, %s971_s18   ;;  %s790_s17 = sphi %s829_s17, %s970_s17   ;;  %s786_s16 = sphi %s827_s16, %s969_s16   ;;  %s782_s15 = sphi %s825_s15, %s968_s15  }
   0x4   : > { %s850_s21 = sadd.s32 1, %s794_s18   ;;  %s113_s22 = sadd.s32 1, %s790_s17 }
   0x5   : > { %s110_s23 = ssub.s32 %s794_s18, %s850_s21  ;;  %p123_p0 = scmp.ne.s32.totalorder %s790_s17, %s786_s16 }
   0x6   : > { %p111_p1 = scmp.eq.s32.totalorder %s110_s23, 0  ;;  %p124_p2 = scmp.eq.s32.totalorder %s846_s19, 1 }
   0x7   : > { %p129_p3 = scmp.ne.s32.totalorder %s786_s16, %s782_s15  ;;  %p130_p4 = scmp.eq.s32.totalorder %s589_s20, 1 }
   0x8   : > { %s861_s24 = scalar_select %p111_p1, %s790_s17, %s113_s22  }
   0x9   : > { %p863_p5 = por %p124_p2, %p123_p0  ;;  %p867_p6 = por %p130_p4, %p129_p3 }
   0xa   : > { %p592_p7 = scmp.ge.s32.totalorder %s794_s18, 1  ;;  %p174_p8 = scmp.lt.s32.totalorder %s794_s18, 3 }
   0xc   : > { %p175_p9 = pnand %p592_p7, %p174_p8 }
   0xd   : > { %s594_s27 = sshll.u32 (!%p175_p9), %s846_s19, 4  ;;  %s614_s7 = sshll.u32 (!%p175_p9), %s846_s19, 7 }
   0xe   : > { %178 = sbr.rel (%p175_p9) target bundleno = 610 (0x262), region = 36  ;;  %p209_p10 = scmp.lt.s32.totalorder (!%p175_p9), %s594_s27, 24 }
   0xf   : > { %s926_s12 = scalar_lea.hbm (!%p175_p9), %s965_s4, %s614_s7  ;;  %s799_s20 = smov (!%p175_p9), [#allocation3]  }
  0x10   : > { %s738_s22 = sshll.u32 (!%p175_p9), %s799_s20, 4  ;;  %s739_s22 = int_to_ptr.vmem [resolvable:$false] %s738_s22 }
  0x11   : > { %s740_s19 = scalar_lea.vmem (!%p175_p9), %s739_s22, 256 }
  0x13   : > { %s973_s27 = smov (!%p209_p10, %s594_s27), 24  ;;  %v714_v2 = vld [vmem:[%s962_s1] sm:$0xff]   ;;  %vm322_vm0 = vcmask 130048   ;;  %v290_v4 = vld [vmem:[%s964_s3 + $0x10] sm:$0xff]  ;;  %v796_v5 = vmov 0   ;;  %v291_v7 = vld [vmem:[%s964_s3 + $0x18] sm:$0xff] }
  0x14   : > { %s595_s28 = sshll.u32 %s973_s27, 3  ;;  %646 = vmatprep.mubr.msk.bf16.mxu0 %vm322_vm0, %v714_v2  ;;  %712 = vset.pattern.permute.xlu1 %v796_v5  ;;  %219 = vst [vmem:[#allocation2] sm:$0xf] %v796_v5  ;;  %220 = vst [vmem:[#allocation2 + $0x4] sm:$0xf] %v796_v5  ;;  %v288_v9 = vld [vmem:[%s964_s3] sm:$0xff] }
  0x15   : > { %s877_s5 = scalar_lea.vmem %s961_s0, %s595_s28  ;;  %221 = vst [vmem:[#allocation2 + $0x8] sm:$0xf] %v796_v5  ;;  %222 = vst [vmem:[#allocation2 + $0xc] sm:$0xf] %v796_v5  ;;  %304 = vperm.xlu1 %712, %v290_v4   ;;  %v289_v11 = vld [vmem:[%s964_s3 + $0x8] sm:$0xff]  ;;  %v604_v13 = vld [vmem:[%s964_s3 + $0x20] sm:$0xff] }
  0x16   : > { %v235_v0 = vld [vmem:[%s877_s5] sm:$0xff]  ;;  %v236_v1 = vld [vmem:[%s877_s5 + $0x8] sm:$0xff]  ;;  %v237_v3 = vld [vmem:[%s877_s5 + $0x10] sm:$0xff]  ;;  %223 = vst [vmem:[#allocation2 + $0x10] sm:$0xf] %v796_v5  ;;  %v797_v28 = vmov 0.0  }
  0x17   : > { %251 = vxpose.xlu0.b32.start [1/16] (narrow) %v235_v0, 16  ;;  %224 = vst [vmem:[#allocation2 + $0x14] sm:$0xf] %v796_v5  ;;  %225 = vst [vmem:[#allocation2 + $0x18] sm:$0xf] %v796_v5  ;;  %v238_v6 = vld [vmem:[%s877_s5 + $0x18] sm:$0xff]  ;;  %650 = vmatprep.subr.bf16.mxu1 %v797_v28 }
  0x18   : > { %226 = vst [vmem:[#allocation2 + $0x1c] sm:$0xf] %v796_v5  ;;  %227 = vst [vmem:[#allocation2 + $0x20] sm:$0xf] %v796_v5  ;;  %v239_v8 = vld [vmem:[%s877_s5 + $0x20] sm:$0xff]  ;;  %v240_v10 = vld [vmem:[%s877_s5 + $0x28] sm:$0xff] }
  0x19   : > { %228 = vst [vmem:[#allocation2 + $0x24] sm:$0xf] %v796_v5  ;;  %229 = vst [vmem:[#allocation2 + $0x28] sm:$0xf] %v796_v5  ;;  %309 = vperm.xlu1 %712, %v291_v7   ;;  %v241_v12 = vld [vmem:[%s877_s5 + $0x30] sm:$0xff]  ;;  %v242_v14 = vld [vmem:[%s877_s5 + $0x38] sm:$0xff] }
  0x1a   : > { %230 = vst [vmem:[#allocation2 + $0x2c] sm:$0xf] %v796_v5  ;;  %231 = vst [vmem:[#allocation2 + $0x30] sm:$0xf] %v796_v5  ;;  %v243_v15 = vld [vmem:[%s877_s5 + $0x40] sm:$0xff]  ;;  %v244_v16 = vld [vmem:[%s877_s5 + $0x48] sm:$0xff] }
  0x1b   : > { %252 = vxpose.xlu0.b32.cont [2/16] (narrow) %v236_v1, 16  ;;  %232 = vst [vmem:[#allocation2 + $0x34] sm:$0xf] %v796_v5  ;;  %233 = vst [vmem:[#allocation2 + $0x38] sm:$0xf] %v796_v5  ;;  %v245_v17 = vld [vmem:[%s877_s5 + $0x50] sm:$0xff] }
  0x1c   : > { %234 = vst [vmem:[#allocation2 + $0x3c] sm:$0xf] %v796_v5  ;;  %v246_v18 = vld [vmem:[%s877_s5 + $0x58] sm:$0xff]  ;;  %v247_v19 = vld [vmem:[%s877_s5 + $0x60] sm:$0xff]  ;;  %v248_v20 = vld [vmem:[%s877_s5 + $0x68] sm:$0xff]  ;;  %vm798_vm1 = vmmov 0  }
  0x1d   : > { %294 = vperm.xlu1 %712, %v288_v9   ;;  %v249_v21 = vld [vmem:[%s877_s5 + $0x70] sm:$0xff]  ;;  %v250_v22 = vld [vmem:[%s877_s5 + $0x78] sm:$0xff]  ;;  %v715_v26 = vld [vmem:[%s962_s1 + $0x8] sm:$0xff]   ;;  %666 = vmatprep.mubr.msk.bf16.mxu1 %vm798_vm1, %v797_v28  ;;  %s201_s5 = sand.u32 1, %s786_s16  }
  0x1e   : > { %v721_v33 = vld [vmem:[#allocation2 + $0x10] sm:$0xff]   ;;  %v418_v54 = vld [vmem:[%s963_s2] sm:$0xf]  ;;  %s593_s6 = sshll.u32 %s201_s5, 3  ;;  %s517_s13 = scalar_lea.sflag [#allocation4], %s201_s5 }
  0x1f   : > { %253 = vxpose.xlu0.b32.cont [3/16] (narrow) %v237_v3, 16  ;;  %v720_v32 = vld [vmem:[#allocation2 + $0x18] sm:$0xff]   ;;  %s203_s8 = scalar_lea.vmem [#allocation3], %s593_s6 }
  0x20   : > { %v719_v31 = vld [vmem:[#allocation2 + $0x20] sm:$0xff]   ;;  %s530_s9 = sshll.u32 %s203_s8, 4  ;;  %s531_s9 = int_to_ptr.vmem [resolvable:$true] %s530_s9 }
  0x21   : > { %299 = vperm.xlu1 %712, %v289_v11   ;;  %v718_v30 = vld [vmem:[#allocation2 + $0x28] sm:$0xff]   ;;  %s734_s14 = scalar_lea.vmem %s531_s9, 128  ;;  %p741_p0 = scmp.lt.s32.totalorder %s531_s9, %s739_s22 }
  0x22   : > { %v717_v29 = vld [vmem:[#allocation2 + $0x30] sm:$0xff]   ;;  %p735_p11 = scmp.ne.s32.totalorder %s531_s9, %s734_s14  ;;  %p742_p1 = scmp.lt.s32.totalorder %s740_s19, %s734_s14 }
  0x23   : > { %254 = vxpose.xlu0.b32.cont [4/16] (narrow) %v238_v6, 16  ;;  %v716_v27 = vld [vmem:[#allocation2 + $0x38] sm:$0xff]  }
  0x24   : > { %651 = vmatpush3.bf16.msra.mxu1 %v716_v27  ;;  %p736_p12 = pnand %p735_p11, %p863_p5  ;;  %p743_p2 = por %p742_p1, %p741_p0 }
  0x25   : > { %423 = vperm.xlu1 %712, %v604_v13   ;;  %652 = vmatprep.subr.bf16.mxu1 %v797_v28 }
  0x26   : > { %p737_p13 = pneg %p736_p12 }
  0x27   : > { %255 = vxpose.xlu0.b32.cont [5/16] (narrow) %v239_v8, 16 }
  0x28   : > { %653 = vmatpush3.bf16.msra.mxu1 %v717_v29  ;;  %p744_p3 = pnand %p743_p2, %p737_p13 }
  0x29   : > { %654 = vmatprep.subr.bf16.mxu1 %v797_v28 }
  0x2b   : > { %256 = vxpose.xlu0.b32.cont [6/16] (narrow) %v240_v10, 16 }
  0x2c   : > { %655 = vmatpush3.bf16.msra.mxu1 %v718_v30 }
  0x2d   : > { %656 = vmatprep.subr.bf16.mxu1 %v797_v28 }
  0x2f   : > { %257 = vxpose.xlu0.b32.cont [7/16] (narrow) %v241_v12, 16 }
  0x30   : > { %657 = vmatpush3.bf16.msra.mxu1 %v719_v31 }
  0x31   : > { %658 = vmatprep.subr.bf16.mxu1 %v797_v28 }
  0x33   : > { %258 = vxpose.xlu0.b32.cont [8/16] (narrow) %v242_v14, 16 }
  0x34   : > { %659 = vmatpush3.bf16.msra.mxu1 %v720_v32 }
  0x35   : > { %660 = vmatprep.subr.bf16.mxu1 %v797_v28 }
  0x37   : > { %259 = vxpose.xlu0.b32.cont [9/16] (narrow) %v243_v15, 16 }
  0x38   : > { %661 = vmatpush3.bf16.msra.mxu1 %v721_v33 }
  0x39   : > { %662 = vmatprep.subr.bf16.mxu1 %v797_v28 }
  0x3b   : > { %260 = vxpose.xlu0.b32.cont [10/16] (narrow) %v244_v16, 16 }
  0x3f   : > { %261 = vxpose.xlu0.b32.cont [11/16] (narrow) %v245_v17, 16 }
  0x43   : > { %262 = vxpose.xlu0.b32.cont [12/16] (narrow) %v246_v18, 16 }
  0x47   : > { %263 = vxpose.xlu0.b32.cont [13/16] (narrow) %v247_v19, 16 }
  0x4b   : > { %264 = vxpose.xlu0.b32.cont [14/16] (narrow) %v248_v20, 16 }
  0x4f   : > { %265 = vxpose.xlu0.b32.cont [15/16] (narrow) %v249_v21, 16 }
  0x53   : > { %266 = vxpose.xlu0.b32.end [16/16] (narrow) %v250_v22, 16 }
  0x7c   : > { %713 = vset.pattern.permute.xlu0 %v796_v5 }
  0x90   : > { %v305_v34 = vpop.permute.xlu1 %304 }
  0x93   : > { %v267_v23 = vpop.trf.xlu0 }
  0x94   : > { %v310_v35 = vpop.permute.xlu1 %309 }
  0x97   : > { %v268_v24 = vpop.trf.xlu0 }
  0x98   : > { %v283_v25 = vpack.c.bf16 %v268_v24, %v267_v23  ;;  %v295_v36 = vpop.permute.xlu1 %294 }
  0x9a   : > { %644 = vmatprep.subr.bf16.mxu0 %v283_v25 }
  0x9b   : > { %645 = vmatpush3.bf16.msra.mxu0 %v283_v25 }
  0x9c   : > { %v300_v43 = vpop.permute.xlu1 %299 }
  0x9e   : > { %647 = vmatmul.mubr.msk.bf16.vlgmr.msra.gmra.mxu0 %vm322_vm0, %v715_v26 }
  0xa0   : > { %v424_v55 = vpop.permute.xlu1 %423 }
 0x15e   : > { %v648_v37 = vpop.f32.mrf.mxu0 }
 0x15f   : > { %v372_v38 = vadd.f32 %v648_v37, %v305_v34 }
 0x160   : > { %v363_v39 = vpop.f32.mrf.mxu0 }
 0x161   : > { %v364_v40 = vadd.f32 %v363_v39, %v295_v36  ;;  %724 = vtanh.f32 %v372_v38 }
 0x162   : > { %v649_v41 = vpop.f32.mrf.mxu0 }
 0x163   : > { %v375_v42 = vadd.f32 %v649_v41, %v310_v35 }
 0x164   : > { %v366_v44 = vpop.f32.mrf.mxu0 }
 0x165   : > { %726 = vtanh.f32 %v375_v42  ;;  %v367_v45 = vadd.f32 %v366_v44, %v300_v43 }
 0x166   : > { %728 = vtanh.f32 %v364_v40 }
 0x167   : > { %730 = vtanh.f32 %v367_v45 }
 0x16e   : > { %v725_v46 = vpop.eup %724 }
 0x172   : > { %v727_v47 = vpop.eup %726 }
 0x173   : > { %v729_v48 = vpop.eup %728  ;;  %v629_v49 = vpack.c.bf16 %v727_v47, %v725_v46 }
 0x174   : > { %v731_v50 = vpop.eup %730 }
 0x175   : > { %631 = vst [vmem:[#allocation2 + $0x8] sm:$0xff] %v629_v49   ;;  %v624_v51 = vpack.c.bf16 %v731_v50, %v729_v48 }
 0x177   : > { %625 = vst [vmem:[#allocation2] sm:$0xff] %v624_v51  }
 0x17c   : > { %v722_v52 = vld [vmem:[#allocation2 + $0x8] sm:$0xff]  }
 0x17d   : > { %663 = vmatpush3.bf16.msra.mxu1 %v722_v52 }
 0x17e   : > { %664 = vmatprep.subr.bf16.mxu1 %v797_v28  ;;  %v723_v53 = vld [vmem:[#allocation2] sm:$0xff]  }
 0x181   : > { %665 = vmatpush3.bf16.msra.mxu1 %v723_v53 }
 0x184   : > { %667 = vmatmul.mubr.bf16.vlgmr.msra.gmra.mxu1 %v418_v54 }
 0x244   : > { %v508_v56 = vpop.f32.mrf.mxu1 }
 0x245   : > { %v509_v57 = vadd.f32 %v508_v56, %v424_v55 }
 0x246   : > { %v668_v58 = vpop.f32.mrf.mxu1 }
 0x247   : > { %732 = vtanh.f32 %v509_v57 }
 0x248   : > { %v511_v59 = vpop.f32.mrf.mxu1 }
 0x24a   : > { %v669_v60 = vpop.f32.mrf.mxu1 }
 0x254   : > { %v733_v61 = vpop.eup %732 }
 0x255   : > { %515 = vst [vmem:[%s203_s8] sm:$0xff] %v733_v61 }
 0x256   : > { %747 = shalt.err (!%p744_p3)
}
 0x257   : > { %s748_s23 = scalar_lea.hbm %s926_s12, 128  ;;  %s752_s29 = scalar_lea.hbm %s965_s4, 256 }
 0x258   : > { %p749_p4 = scmp.ne.s32.totalorder %s926_s12, %s748_s23  ;;  %p753_p9 = scmp.lt.s32.totalorder %s926_s12, %s965_s4 }
 0x259   : > { %p754_p10 = scmp.lt.s32.totalorder %s752_s29, %s748_s23 }
 0x25a   : > { %p750_p7 = pnand %p749_p4, %p863_p5 }
 0x25b   : > { %p755_p11 = por %p754_p10, %p753_p9 }
 0x25c   : > { %p751_p8 = pneg %p750_p7 }
 0x25e   : > { %p756_p12 = pnand %p755_p11, %p751_p8 }
 0x260   : > { %759 = shalt.err (!%p756_p12)
}
 0x261   : > { %670 = dma.vmem_to_hbm [thread:$0]  (%p863_p5), %s531_s9, 128, %s926_s12, %s517_s13  }
 0x262 PF: > { %p676_p13 = scmp.ge.s32.totalorder %s794_s18, 2  ;;  %s542_s6 = sand.u32 1, %s782_s15  }
 0x263   : > { %s543_s7 = scalar_lea.sflag [#allocation4], %s542_s6 }
 0x264   : > { %p673_p0 = pnand %p676_p13, %p867_p6 }
 0x266   : > { %p674_p1 = pneg %p673_p0 }
 0x268   : > { %777 = dma.done.wait (%p674_p1), %s543_s7, 128  }
 0x269   : > { %779 = vsyncadd (%p674_p1), %s543_s7, 4294967168  ;;  %p14_p2 = scmp.ge.s32.totalorder %s850_s21, 4   ;;  %s968_s15 = smov %s786_s16 }
 0x26a   : > { %s969_s16 = smov %s790_s17  ;;  %s970_s17 = smov %s861_s24 }
 0x26b   : > { %s971_s18 = smov %s850_s21  ;;  %16 = sbr.rel (!%p14_p2) target bundleno = 3 (0x3), region = 72 }
 0x270   :  { %548 = vsyncpa [#allocation4], 1 }
 0x271   :  { %550 = vsyncpa [#allocation4 + $0x1], 1 }

</bundles_post_ra>
